<compile_context>
chip_gen: v7x
topology: tpu7x:2x2x1
jax: 0.10.0
libtpu: 0.0.40
codegen_flags: <defaults>
</compile_context>

<pallas_src>
import jax
import jax.numpy as jnp
from jax.experimental import pallas as pl
from jax.experimental.pallas import tpu as pltpu


def _round_up(v, m):
    return ((v + m - 1) // m) * m


# -----------------------------------------------------------------------------
# Fast path: in_features == out_features == 1  (the LR(1, 1) spec case).
# -----------------------------------------------------------------------------
_LANES = 1024        # lane-dense slab width (multiple of 128)
_BLOCK_ROWS = 512    # sublane rows per grid block (multiple of 8)


def _scale_bias_kernel(w_ref, b_ref, x_ref, o_ref):
    # w_ref, b_ref: (1, 1) scalars in SMEM.  x_ref / o_ref: lane-dense VMEM tiles.
    w = w_ref[0, 0]
    b = b_ref[0, 0]
    o_ref[...] = (x_ref[...] * w + b).astype(o_ref.dtype)   # VPU only


def _linear_k1_o1(x, weight, bias):
    n = x.shape[0]

    if n <= _LANES:
        lanes = max(128, _round_up(n, 128))
        block_rows = 1
        rows = 1
    else:
        lanes = _LANES
        rows_needed = -(-n // lanes)
        if rows_needed <= _BLOCK_ROWS:
            block_rows = rows_needed          # single block: full dims OK
            rows = rows_needed
        else:
            block_rows = _BLOCK_ROWS          # multiple of 8 -> aligned tiles
            rows = _round_up(rows_needed, block_rows)

    n_pad = rows * lanes
    x_flat = x.reshape(n)
    if n_pad != n:
        # TODO(synk): fold the ragged-tail pad/slice into the kernel (masked
        # pltpu.store on the last block) to save the extra HBM pass at large N.
        x_flat = jnp.pad(x_flat, (0, n_pad - n))
    x_lane = x_flat.reshape(rows, lanes)      # batch on lanes -> unmasked vst

    out = pl.pallas_call(
        _scale_bias_kernel,
        out_shape=jax.ShapeDtypeStruct((rows, lanes), x.dtype),
        grid_spec=pltpu.PrefetchScalarGridSpec(
            num_scalar_prefetch=0,
            grid=(rows // block_rows,),
            in_specs=[
                pl.BlockSpec(memory_space=pltpu.SMEM),            # scalar weight
                pl.BlockSpec(memory_space=pltpu.SMEM),            # scalar bias
                pl.BlockSpec((block_rows, lanes), lambda i: (i, 0)),
            ],
            out_specs=pl.BlockSpec((block_rows, lanes), lambda i: (i, 0)),
        ),
        compiler_params=pltpu.CompilerParams(
            dimension_semantics=("parallel",)),
    )(weight.reshape(1, 1).astype(jnp.float32),
      bias.reshape(1, 1).astype(jnp.float32),
      x_lane)

    return out.reshape(n_pad)[:n].reshape(n, 1)


# -----------------------------------------------------------------------------
# General path: tiled x @ W.T + b with a pre-transposed (K, O) weight so the
# kernel is a plain (M,K)@(K,N) MXU contraction.
# -----------------------------------------------------------------------------
_TM, _TN, _TK = 256, 256, 512


def _matmul_bias_kernel(x_ref, w_ref, b_ref, o_ref, acc_ref):
    @pl.when(pl.program_id(2) == 0)
    def _init():
        acc_ref[...] = jnp.zeros_like(acc_ref)

    # TODO(synk): optionally cast x/w tiles to bf16 here (keeping the f32
    # accumulator) for a multi-x MXU throughput gain if accuracy budget allows.
    acc_ref[...] += jnp.dot(x_ref[...], w_ref[...],
                            preferred_element_type=jnp.float32)

    @pl.when(pl.program_id(2) == pl.num_programs(2) - 1)
    def _finalize():
        o_ref[...] = (acc_ref[...] + b_ref[...]).astype(o_ref.dtype)


def _linear_general(x, weight, bias):
    m, k = x.shape
    n_out = weight.shape[0]

    # One-time wrapper transpose: weight lane axis becomes the output-N axis,
    # so MXU feed and output stores stay unmasked and the XLU stays idle.
    w_t = weight.T                      # (K, N)
    b2d = bias.reshape(1, n_out)

    tm = min(_TM, _round_up(m, 8))
    tn = min(_TN, _round_up(n_out, 128))
    tk = min(_TK, _round_up(k, 128))
    mp = _round_up(m, tm)
    np_ = _round_up(n_out, tn)
    kp = _round_up(k, tk)

    if (mp, kp) != (m, k):
        x = jnp.pad(x, ((0, mp - m), (0, kp - k)))
    if (kp, np_) != (k, n_out):
        w_t = jnp.pad(w_t, ((0, kp - k), (0, np_ - n_out)))
    if np_ != n_out:
        b2d = jnp.pad(b2d, ((0, 0), (0, np_ - n_out)))

    grid = (mp // tm, np_ // tn, kp // tk)

    out = pl.pallas_call(
        _matmul_bias_kernel,
        out_shape=jax.ShapeDtypeStruct((mp, np_), x.dtype),
        grid_spec=pltpu.PrefetchScalarGridSpec(
            num_scalar_prefetch=0,
            grid=grid,
            in_specs=[
                pl.BlockSpec((tm, tk), lambda i, j, kk: (i, kk)),
                pl.BlockSpec((tk, tn), lambda i, j, kk: (kk, j)),
                pl.BlockSpec((1, tn), lambda i, j, kk: (0, j)),
            ],
            out_specs=pl.BlockSpec((tm, tn), lambda i, j, kk: (i, j)),
            scratch_shapes=[pltpu.VMEM((tm, tn), jnp.float32)],
        ),
        compiler_params=pltpu.CompilerParams(
            dimension_semantics=("parallel", "parallel", "arbitrary"),
            vmem_limit_bytes=48 * 1024 * 1024,
        ),
        cost_estimate=pl.CostEstimate(
            flops=2 * mp * np_ * kp,
            transcendentals=0,
            bytes_accessed=4 * (mp * kp + kp * np_ + mp * np_ + np_),
        ),
    )(x, w_t, b2d)

    return out[:m, :n_out]


def linear_forward(x, weight, bias):
    """Pallas equivalent of torch.nn.Linear(in, out)(x): x @ W.T + b.

    x: (N, in_features), weight: (out_features, in_features),
    bias: (out_features,)  ->  (N, out_features).
    """
    out_features, in_features = weight.shape
    if in_features == 1 and out_features == 1:
        return _linear_k1_o1(x, weight, bias)
    return _linear_general(x, weight, bias)


class LR:
    """Mirror of the PyTorch LR module: a single nn.Linear layer."""

    def __init__(self, input_size, output_size, key):
        # PyTorch nn.Linear default init: U(-1/sqrt(in), 1/sqrt(in)).
        kw, kb = jax.random.split(key)
        bound = 1.0 / (input_size ** 0.5)
        self.weight = jax.random.uniform(
            kw, (output_size, input_size), jnp.float32, -bound, bound)
        self.bias = jax.random.uniform(
            kb, (output_size,), jnp.float32, -bound, bound)

    def __call__(self, x):
        return linear_forward(x, self.weight, self.bias)


if __name__ == "__main__":
    key = jax.random.PRNGKey(0)
    k_model, k_x, k_x2, k_gx, k_gw, k_gb, k_hx, k_hw, k_hb = jax.random.split(key, 9)

    # Spec case: x = torch.randn(100, 1) * 10, LR(1, 1)  -> fast VPU path.
    x = jax.random.normal(k_x, (100, 1), jnp.float32) * 10.0
    model = LR(input_size=1, output_size=1, key=k_model)
    pred = jax.block_until_ready(model(x))
    ref = x @ model.weight.T + model.bias
    assert pred.shape == (100, 1)
    assert jnp.allclose(pred, ref, atol=1e-5, rtol=1e-5)

    # Fast path, wider-than-128-lane branch (N > 1024 -> 1024-lane slab).
    x2 = jax.random.normal(k_x2, (3000, 1), jnp.float32) * 10.0
    pred2 = jax.block_until_ready(model(x2))
    ref2 = x2 @ model.weight.T + model.bias
    assert pred2.shape == (3000, 1)
    assert jnp.allclose(pred2, ref2, atol=1e-5, rtol=1e-5)

    # General (tiled MXU, pre-transposed weight) path at a modest shape.
    xg = jax.random.normal(k_gx, (32, 16), jnp.float32)
    wg = jax.random.normal(k_gw, (8, 16), jnp.float32) * 0.1
    bg = jax.random.normal(k_gb, (8,), jnp.float32) * 0.1
    pg = jax.block_until_ready(linear_forward(xg, wg, bg))
    rg = xg @ wg.T + bg
    assert pg.shape == (32, 8)
    assert jnp.allclose(pg, rg, atol=1e-3, rtol=1e-3)

    # General path with more than one K block (exercises the f32 accumulator
    # init/accumulate/finalize across the reduction grid axis).
    xh = jax.random.normal(k_hx, (64, 600), jnp.float32)
    wh = jax.random.normal(k_hw, (8, 600), jnp.float32) * 0.1
    bh = jax.random.normal(k_hb, (8,), jnp.float32) * 0.1
    ph = jax.block_until_ready(linear_forward(xh, wh, bh))
    rh = xh @ wh.T + bh
    assert ph.shape == (64, 8)
    assert jnp.allclose(ph, rh, atol=1e-2, rtol=1e-2)

    print("KERNEL_OK")
</pallas_src>

<mosaic_0001>
module attributes {stable_mosaic.version = 11 : i64} {
  func.func @_scale_bias_kernel(%arg0: i32, %arg1: memref<1x1xf32, #tpu.memory_space<smem>>, %arg2: memref<1x1xf32, #tpu.memory_space<smem>>, %arg3: memref<1x128xf32, #tpu.memory_space<vmem>>, %arg4: memref<1x128xf32, #tpu.memory_space<vmem>>) attributes {dimension_semantics = [#tpu.dimension_semantics<parallel>], iteration_bounds = array<i64: 1>, scalar_prefetch = 0 : i64, scratch_operands = 0 : i64, tpu.core_type = #tpu.core_type<tc>, window_params = [{transform_indices = @transform_0, window_bounds = array<i64: 1, 1>}, {transform_indices = @transform_1, window_bounds = array<i64: 1, 1>}, {transform_indices = @transform_2, window_bounds = array<i64: 1, 128>}, {transform_indices = @transform_3, window_bounds = array<i64: 1, 128>}]} {
    %c0 = arith.constant 0 : index
    %c0_0 = arith.constant 0 : index
    %0 = memref.load %arg1[%c0, %c0_0] : memref<1x1xf32, #tpu.memory_space<smem>>
    %c0_1 = arith.constant 0 : index
    %c0_2 = arith.constant 0 : index
    %1 = memref.load %arg2[%c0_1, %c0_2] : memref<1x1xf32, #tpu.memory_space<smem>>
    %c0_3 = arith.constant 0 : index
    %c0_4 = arith.constant 0 : index
    %2 = vector.load %arg3[%c0_3, %c0_4] : memref<1x128xf32, #tpu.memory_space<vmem>>, vector<1x128xf32>
    %3 = vector.broadcast %0 : f32 to vector<1x128xf32>
    %4 = arith.mulf %2, %3 : vector<1x128xf32>
    %5 = vector.broadcast %1 : f32 to vector<1x128xf32>
    %6 = arith.addf %4, %5 : vector<1x128xf32>
    %c0_5 = arith.constant 0 : index
    %c0_6 = arith.constant 0 : index
    %7 = vector.load %arg4[%c0_5, %c0_6] : memref<1x128xf32, #tpu.memory_space<vmem>>, vector<1x128xf32>
    tpu.vector_store %arg4[%c0_5, %c0_6], %6 {strides = array<i32>} : memref<1x128xf32, #tpu.memory_space<vmem>>, vector<1x128xf32>,
    return
  }
  func.func @transform_0(%arg0: i32) -> (i32, i32) {
    %c0_i32 = arith.constant 0 : i32
    %c0_i32_0 = arith.constant 0 : i32
    %c0_i32_1 = arith.constant 0 : i32
    return %c0_i32, %c0_i32_0 : i32, i32
  }
  func.func @transform_1(%arg0: i32) -> (i32, i32) {
    %c0_i32 = arith.constant 0 : i32
    %c0_i32_0 = arith.constant 0 : i32
    %c0_i32_1 = arith.constant 0 : i32
    return %c0_i32, %c0_i32_0 : i32, i32
  }
  func.func @transform_2(%arg0: i32) -> (i32, i32) {
    %c0_i32 = arith.constant 0 : i32
    %c0_i32_0 = arith.constant 0 : i32
    return %arg0, %c0_i32 : i32, i32
  }
  func.func @transform_3(%arg0: i32) -> (i32, i32) {
    %c0_i32 = arith.constant 0 : i32
    %c0_i32_0 = arith.constant 0 : i32
    return %arg0, %c0_i32 : i32, i32
  }
}

</mosaic_0001>

<bundles_post_ra>
// kernel: tpu_custom_call.1
= control target key start
LH: loop header
LB: loop body
LE: loop exit
PB: predicated region body
PF: predicated region fallthrough
CT: control target
= control target key end

     0   :  { %s106_s0 = inlined_call_operand.<no memory space> [shape: f32[1,1], index: 0, kind: input, shape index: {}]   ;;  %s107_s1 = inlined_call_operand.<no memory space> [shape: f32[1,1], index: 1, kind: input, shape index: {}]   ;;  %s108_s2 = inlined_call_operand.vmem [shape: f32[1,128], index: 2, kind: input, shape index: {}]   ;;  %s109_s3 = inlined_call_operand.hbm [shape: f32[1,128], index: 3, kind: output, shape index: {}]  }
   0x1   :  { %v19_v0 = vld [vmem:[%s108_s2] sm:$0x1]  ;;  %v20_v1 = vstv %s106_s0  ;;  %v22_v2 = vstv %s107_s1 }
   0x2   :  { %10 = vsyncpa [#allocation5], 0  ;;  %v21_v3 = vmul.f32 %v20_v1, %v19_v0  ;;  %s64_s18 = smov [#allocation4]  }
   0x3   :  { %s31_s19 = sshll.u32 %s64_s18, 4  ;;  %s32_s19 = int_to_ptr.vmem [resolvable:$true] %s31_s19 }
   0x4   :  { %v23_v4 = vadd.f32 %v22_v2, %v21_v3  ;;  %s40_s20 = scalar_lea.vmem %s32_s19, 16  ;;  %s44_s21 = scalar_lea.vmem %s32_s19, 32 }
   0x5   :  { %p41_p0 = scmp.ne.s32.totalorder %s32_s19, %s40_s20  ;;  %p45_p1 = scmp.lt.s32.totalorder %s32_s19, %s32_s19 }
   0x6   :  { %24 = vst [vmem:[#allocation4] sm:$0x1] %v23_v4  ;;  %p46_p2 = scmp.lt.s32.totalorder %s44_s21, %s40_s20 }
   0x8   :  { %p47_p3 = por %p46_p2, %p45_p1 }
   0xa   :  { %p48_p4 = pnand %p47_p3, %p41_p0 }
   0xc   :  { %51 = shalt.err (!%p48_p4)
}
   0xd   :  { %s52_s22 = scalar_lea.hbm %s109_s3, 16 }
   0xe   :  { %p53_p5 = scmp.ne.s32.totalorder %s109_s3, %s52_s22  ;;  %p56_p6 = scmp.lt.u32.totalorder %s52_s22, %s109_s3 }
  0x10   :  { %p58_p7 = pnand %p56_p6, %p53_p5 }
  0x12   :  { %61 = shalt.err (!%p58_p7)
}
  0x13   :  { %34 = dma.vmem_to_hbm [thread:$0]  %s32_s19, 16, %s109_s3, [#allocation5]  }
  0x14   :  { %62 = dma.done.wait [#allocation5], 16  }
  0x15   :  { %63 = vsyncadd [#allocation5], 4294967280 }
  0x16   :  { %38 = vsyncpa [#allocation5], 1 }

</bundles_post_ra>
